<compile_context>
chip_gen: v6e
topology: v6e:2x2x1
jax: 0.10.0
libtpu: 0.0.40
codegen_flags: <defaults>
</compile_context>

<pallas_src>
import jax
import jax.numpy as jnp
from jax.experimental import pallas as pl
from jax.experimental.pallas import tpu as pltpu


# ----------------------------------------------------------------------------
# Primary path: zero-HBM-traffic aliased pass-through (no DMA, empty body).
# ----------------------------------------------------------------------------
def _alias_passthrough_kernel(x_ref, o_ref):
    # Output is the same buffer as the input (input_output_aliases={0: 0});
    # nothing needs to move.  `touch` pins a write-dependency on the aliased
    # output so the result is well-defined without generating any DMA.
    del x_ref
    pltpu.touch(o_ref)


def _aliased_passthrough(img):
    return pl.pallas_call(
        _alias_passthrough_kernel,
        out_shape=jax.ShapeDtypeStruct(img.shape, img.dtype),
        in_specs=[pl.BlockSpec(memory_space=pl.ANY)],
        out_specs=pl.BlockSpec(memory_space=pl.ANY),
        input_output_aliases={0: 0},
        compiler_params=pltpu.CompilerParams(has_side_effects=True),
    )(img)


# ----------------------------------------------------------------------------
# Fallback path: lane-dense streaming identity copy at the HBM roofline.
# ----------------------------------------------------------------------------
_TARGET_BLOCK_BYTES = 8 * 1024 * 1024   # 2 (in+out) x 2 (dbl-buf) x 8 MiB = 32 MiB of buffers
_VMEM_LIMIT_BYTES = 40 * 1024 * 1024    # > 32 MiB of buffers, < 64 MiB physical VMEM (v7x per-TC)


def _copy_kernel(x_ref, o_ref):
    o_ref[...] = x_ref[...]


def _pick_block_rows(rows, sub, cap_rows):
    """Rows per block: multiple of `sub`, <= cap, divisor of `rows` when cheap."""
    cap = max(sub, (min(cap_rows, rows) // sub) * sub)
    if rows <= cap:
        # Whole array fits in one block; still split in two when cleanly
        # possible so both v7x TensorCores get a "parallel" grid step.
        if rows % (2 * sub) == 0:
            return rows // 2
        return rows  # full extent along rows: always a legal block shape
    # Prefer the largest multiple of `sub` that divides `rows` (no masked tail).
    r = cap
    while r >= sub and rows % r != 0:
        r -= sub
    if r < sub or r * 8 < cap:
        # No reasonable exact divisor: take full-size blocks and accept one
        # partially-masked tail step (lane dimension stays full 128-multiple).
        r = cap
    return r


def _tiled_copy_flat(flat):
    """Lane-dense streaming identity copy of a flat 1-D array (len % 128 == 0)."""
    total = int(flat.shape[0])
    itemsize = flat.dtype.itemsize
    # Native copy for every width: sublane tile 8 (32-bit), 16 (16-bit), 32 (8-bit).
    sub = 8 * max(1, 4 // itemsize)

    lanes = 512 if total % 512 == 0 else (256 if total % 256 == 0 else 128)
    rows = total // lanes
    cap_rows = max(sub, _TARGET_BLOCK_BYTES // (lanes * itemsize))
    block_rows = _pick_block_rows(rows, sub, cap_rows)
    grid = (pl.cdiv(rows, block_rows),)

    x2 = flat.reshape(rows, lanes)
    out = pl.pallas_call(
        _copy_kernel,
        out_shape=jax.ShapeDtypeStruct((rows, lanes), flat.dtype),
        grid_spec=pltpu.PrefetchScalarGridSpec(
            num_scalar_prefetch=0,
            grid=grid,
            in_specs=[pl.BlockSpec((block_rows, lanes), lambda i: (i, 0))],
            out_specs=pl.BlockSpec((block_rows, lanes), lambda i: (i, 0)),
        ),
        compiler_params=pltpu.CompilerParams(
            dimension_semantics=("parallel",),  # independent blocks; HBM-bound copy
            vmem_limit_bytes=_VMEM_LIMIT_BYTES,
        ),
        cost_estimate=pl.CostEstimate(
            flops=0, transcendentals=0, bytes_accessed=2 * total * itemsize),
    )(x2)
    return out.reshape(total)


def _identity_pallas(img):
    """Identity of `img` expressed as a Pallas kernel (zero-copy when possible)."""
    try:
        # Zero-HBM-traffic pass-through (review's top recommendation).
        return _aliased_passthrough(img)
    except Exception:
        # Safety net: if the aliased empty-body kernel cannot lower on this
        # toolchain, fall back to the near-roofline lane-dense streaming copy.
        pass

    total = int(img.size)
    flat = img.reshape(-1)
    if total % 128 == 0:
        return _tiled_copy_flat(flat).reshape(img.shape)
    # Rare ragged fallback: pad to a 128-lane multiple (one extra small wrapper
    # pass), copy full-width, then trim — keeps every kernel store unmasked.
    pad = (-total) % 128
    out = _tiled_copy_flat(jnp.pad(flat, (0, pad)))
    return out[:total].reshape(img.shape)


class AffineTransform:
    """JAX/Pallas port of my_transforms.AffineTransform (reference forward is a no-op)."""

    def __init__(self, p):
        self.p = p  # kept for parity with the PyTorch module; unused in forward

    def __call__(self, img):
        return self.forward(img)

    def forward(self, img):
        # Reference forward() body is `pass`; the identity pass-through of `img`
        # is expressed as a zero-copy aliased Pallas kernel (see _identity_pallas).
        return _identity_pallas(img)


if __name__ == "__main__":
    key = jax.random.PRNGKey(0)
    # Small NCHW image batch consistent with an image-transform module.
    x = jax.random.normal(key, (2, 4, 16, 16), dtype=jnp.float32)

    module = AffineTransform(p=0.5)
    y = module(x)
    y = jax.block_until_ready(y)

    # Sanity check: identity pass-through of the input image.
    assert y.shape == x.shape and y.dtype == x.dtype
    assert bool(jnp.allclose(y, x))

    print("KERNEL_OK")
</pallas_src>

<mosaic_0001>
module attributes {stable_mosaic.version = 11 : i64} {
  func.func @_alias_passthrough_kernel(%arg0: memref<2x4x16x16xf32, #tpu.memory_space<any>>, %arg1: memref<2x4x16x16xf32, #tpu.memory_space<any>>) attributes {dimension_semantics = [], scalar_prefetch = 0 : i64, scratch_operands = 0 : i64, tpu.core_type = #tpu.core_type<tc>} {
    return
  }
}

module attributes {stable_mosaic.version = 11 : i64} {
  func.func @_copy_kernel(%arg0: i32, %arg1: memref<4x512xf32, #tpu.memory_space<vmem>>, %arg2: memref<4x512xf32, #tpu.memory_space<vmem>>) attributes {dimension_semantics = [#tpu.dimension_semantics<parallel>], iteration_bounds = array<i64: 1>, scalar_prefetch = 0 : i64, scratch_operands = 0 : i64, tpu.core_type = #tpu.core_type<tc>, window_params = [{transform_indices = @transform_0, window_bounds = array<i64: 4, 512>}, {transform_indices = @transform_1, window_bounds = array<i64: 4, 512>}]} {
    %c0 = arith.constant 0 : index
    %c0_0 = arith.constant 0 : index
    %0 = vector.load %arg1[%c0, %c0_0] : memref<4x512xf32, #tpu.memory_space<vmem>>, vector<4x512xf32>
    %c0_1 = arith.constant 0 : index
    %c0_2 = arith.constant 0 : index
    %1 = vector.load %arg2[%c0_1, %c0_2] : memref<4x512xf32, #tpu.memory_space<vmem>>, vector<4x512xf32>
    tpu.vector_store %arg2[%c0_1, %c0_2], %0 {strides = array<i32>} : memref<4x512xf32, #tpu.memory_space<vmem>>, vector<4x512xf32>,
    return
  }
  func.func @transform_0(%arg0: i32) -> (i32, i32) {
    %c0_i32 = arith.constant 0 : i32
    %c0_i32_0 = arith.constant 0 : i32
    return %arg0, %c0_i32 : i32, i32
  }
  func.func @transform_1(%arg0: i32) -> (i32, i32) {
    %c0_i32 = arith.constant 0 : i32
    %c0_i32_0 = arith.constant 0 : i32
    return %arg0, %c0_i32 : i32, i32
  }
}

</mosaic_0001>

<bundles_post_ra>
// kernel: tpu_custom_call.1
= control target key start
LH: loop header
LB: loop body
LE: loop exit
PB: predicated region body
PF: predicated region fallthrough
CT: control target
= control target key end

     0   :  { %s16_s0 = inlined_call_operand.hbm [shape: f32[2,4,16,16], index: 0, kind: input, shape index: {}, may-alias: {0,1}]   ;;  %s17_s1 = inlined_call_operand.hbm [shape: f32[2,4,16,16], index: 1, kind: output, shape index: {}, may-alias: {0,1}]  }

// kernel: tpu_custom_call.1
= control target key start
LH: loop header
LB: loop body
LE: loop exit
PB: predicated region body
PF: predicated region fallthrough
CT: control target
= control target key end

     0   :  { %6 = vsyncpa [#allocation3], 0  ;;  %s104_s0 = inlined_call_operand.hbm [shape: f32[4,512], index: 0, kind: input, shape index: {}]   ;;  %s105_s1 = inlined_call_operand.hbm [shape: f32[4,512], index: 1, kind: output, shape index: {}]  }
   0x1   :  { %7 = vsyncpa [#allocation4], 0  ;;  %s86_s6 = smov [#allocation2]  }
   0x2   :  { %s14_s7 = sshll.u32 %s86_s6, 4  ;;  %s15_s7 = int_to_ptr.vmem [resolvable:$true] %s14_s7 }
   0x3   :  { %s50_s8 = scalar_lea.vmem %s15_s7, 256  ;;  %p55_p1 = scmp.lt.s32.totalorder %s15_s7, %s15_s7 }
   0x4   :  { %p51_p0 = scmp.ne.s32.totalorder %s15_s7, %s50_s8  ;;  %p56_p2 = scmp.lt.s32.totalorder %s50_s8, %s50_s8 }
   0x6   :  { %p57_p3 = por %p56_p2, %p55_p1 }
   0x8   :  { %p58_p4 = pnand %p57_p3, %p51_p0 }
   0xa   :  { %61 = shalt.err (!%p58_p4)
}
   0xb   :  { %17 = dma.hbm_to_vmem [thread:$0]  %s104_s0, 256, %s15_s7, [#allocation3]  }
   0xc   :  { %82 = dma.done.wait [#allocation3], 256  }
   0xd   :  { %83 = vsyncadd [#allocation3], 4294967040  ;;  %s87_s11 = smov [#allocation5]   ;;  %v21_v0 = vld [vmem:[#allocation2] sm:$0xff]  ;;  %v22_v1 = vld [vmem:[#allocation2 + $0x8] sm:$0xff] }
   0xe   :  { %s31_s12 = sshll.u32 %s87_s11, 4  ;;  %23 = vst [vmem:[#allocation5] sm:$0xff] %v21_v0  ;;  %24 = vst [vmem:[#allocation5 + $0x8] sm:$0xff] %v22_v1  ;;  %s32_s12 = int_to_ptr.vmem [resolvable:$true] %s31_s12 }
   0xf   :  { %s62_s13 = scalar_lea.vmem %s32_s12, 256  ;;  %p67_p6 = scmp.lt.s32.totalorder %s32_s12, %s32_s12 }
  0x10   :  { %p63_p5 = scmp.ne.s32.totalorder %s32_s12, %s62_s13  ;;  %p68_p7 = scmp.lt.s32.totalorder %s62_s13, %s62_s13 }
  0x12   :  { %p69_p8 = por %p68_p7, %p67_p6 }
  0x14   :  { %p70_p9 = pnand %p69_p8, %p63_p5 }
  0x16   :  { %73 = shalt.err (!%p70_p9)
}
  0x17   :  { %34 = dma.vmem_to_hbm [thread:$0]  %s32_s12, 256, %s105_s1, [#allocation4]  }
  0x18   :  { %84 = dma.done.wait [#allocation4], 256  }
  0x19   :  { %85 = vsyncadd [#allocation4], 4294967040 }
  0x1a   :  { %38 = vsyncpa [#allocation3], 1 }
  0x1b   :  { %39 = vsyncpa [#allocation4], 1 }

</bundles_post_ra>
